<compile_context>
chip_gen: v5e
topology: v5e:2x2
jax: 0.10.0
libtpu: 0.0.40
codegen_flags: <defaults>
</compile_context>

<pallas_src>
import math

import jax
import jax.numpy as jnp
from jax.experimental import pallas as pl
from jax.experimental.pallas import tpu as pltpu

# ----- true (unpadded) sizes from the PyTorch module -----
IN_SIZE = 106
HID = IN_SIZE * 2       # 212
OUT_SIZE = 1

# ----- padded hidden size (multiple of 128 lanes) -----
HID_P = ((HID + 127) // 128) * 128   # 256

MAX_TB = 1024           # batch-tile rows per grid step (sweep 1024-2048 if desired)


def _round_up(n, m):
    return ((n + m - 1) // m) * m


def _choose_tb(batch):
    """Batch tile: big enough to amortize ~0.35us/step overhead, but keep
    >= 2 grid steps when possible so v7x's two TensorCores both get work."""
    if batch <= 8:
        return batch                                   # single full-dim block
    return min(MAX_TB, _round_up(pl.cdiv(batch, 2), 8))


# --------------------------------------------------------------------------
# Kernel: one batch tile of TB rows; weights/biases resident across grid steps.
# --------------------------------------------------------------------------
def _dqn_kernel(x_ref, w1_ref, b1_ref, w2_ref, b2_ref, w3_ref, b3_ref, o_ref):
    # x tile: (TB, 106) in its native dtype; cast to bf16 in VMEM (VPU, free).
    x = x_ref[...].astype(w1_ref.dtype)

    # fc1 + ReLU : bf16 MXU, f32 accumulate. K=106 (unaligned) is handled by
    # Mosaic's internal padding/masking.
    h1 = jnp.dot(x, w1_ref[...], preferred_element_type=jnp.float32) + b1_ref[...]
    h1 = jnp.maximum(h1, 0.0)                               # (TB, HID_P) f32

    # fc2 + ReLU
    h2 = jnp.dot(h1.astype(w2_ref.dtype), w2_ref[...],
                 preferred_element_type=jnp.float32) + b2_ref[...]
    h2 = jnp.maximum(h2, 0.0)                               # (TB, HID_P) f32

    # fc3 (true output width = 1): compute as w3_row @ h2^T so the result is a
    # lane-dense (1, TB) row (no relayout, no 1-wide masked stores).
    w3 = w3_ref[...]                                        # (1, HID_P) f32
    row = jax.lax.dot_general(w3, h2, (((1,), (1,)), ((), ())),
                              preferred_element_type=jnp.float32)   # (1, TB)
    b3 = b3_ref[0, 0]                                       # scalar from SMEM
    o_ref[...] = jnp.reshape(row + b3, (1, 1, row.shape[-1]))


# --------------------------------------------------------------------------
# One-time parameter preparation (pad hidden dim + cast). Cache the result;
# do NOT call this per forward.
# --------------------------------------------------------------------------
def prepare_params(params, weight_dtype=jnp.bfloat16):
    w1 = jnp.zeros((IN_SIZE, HID_P), weight_dtype)
    w1 = w1.at[:, :HID].set(params["w1"].astype(weight_dtype))        # (106, 256) bf16
    w2 = jnp.zeros((HID_P, HID_P), weight_dtype)
    w2 = w2.at[:HID, :HID].set(params["w2"].astype(weight_dtype))     # (256, 256) bf16
    # fc3 weight as a single f32 row (true width 1) -> no dead 128-col padding
    w3 = jnp.zeros((1, HID_P), jnp.float32)
    w3 = w3.at[:, :HID].set(params["w3"].T.astype(jnp.float32))       # (1, 256) f32
    b1 = jnp.zeros((1, HID_P), jnp.float32).at[:, :HID].set(params["b1"])
    b2 = jnp.zeros((1, HID_P), jnp.float32).at[:, :HID].set(params["b2"])
    b3 = params["b3"].reshape(1, 1).astype(jnp.float32)               # (1, 1) f32 (SMEM)
    return {"w1": w1, "b1": b1, "w2": w2, "b2": b2, "w3": w3, "b3": b3}


# --------------------------------------------------------------------------
# Forward wrapper: no padding / copying of x — it goes straight to the kernel.
# --------------------------------------------------------------------------
@jax.jit
def dqn_forward(x, padded_params):
    """x: [B, 106] (f32 or bf16) -> [B, 1] float32."""
    B = x.shape[0]
    tb = _choose_tb(B)
    n_blocks = pl.cdiv(B, tb)
    p = padded_params

    out = pl.pallas_call(
        _dqn_kernel,
        out_shape=jax.ShapeDtypeStruct((n_blocks, 1, tb), jnp.float32),
        grid=(n_blocks,),
        in_specs=[
            # x tile: unpadded last dim (106 == full array dim), pipelined.
            # If xprof shows exposed x DMA on v6e at large tb, add
            # pipeline_mode=pl.Buffered(3) here.
            pl.BlockSpec((tb, IN_SIZE), lambda i: (i, 0)),
            pl.BlockSpec((IN_SIZE, HID_P), lambda i: (0, 0)),   # w1 (resident)
            pl.BlockSpec((1, HID_P), lambda i: (0, 0)),         # b1
            pl.BlockSpec((HID_P, HID_P), lambda i: (0, 0)),     # w2 (resident)
            pl.BlockSpec((1, HID_P), lambda i: (0, 0)),         # b2
            pl.BlockSpec((1, HID_P), lambda i: (0, 0)),         # w3 row
            pl.BlockSpec(memory_space=pltpu.MemorySpace.SMEM),  # b3 scalar
        ],
        # Lane-dense output row per grid step.
        out_specs=pl.BlockSpec((1, 1, tb), lambda i: (i, 0, 0)),
        compiler_params=pltpu.CompilerParams(
            dimension_semantics=("parallel",),   # batch tiles independent (v7x: 2 TCs)
            vmem_limit_bytes=32 << 20,           # footprint is a few MiB at tb=1024
        ),
    )(x, p["w1"], p["b1"], p["w2"], p["b2"], p["w3"], p["b3"])

    # (n_blocks, 1, tb) -> flat padded batch -> (B, 1). Rows beyond B in a
    # partial last tile are undefined and sliced off here.
    return out.reshape(n_blocks * tb)[:B].reshape(B, OUT_SIZE)


# --------------------------------------------------------------------------
# Init mimicking nn.Linear defaults (uniform(-1/sqrt(fan_in), 1/sqrt(fan_in)))
# --------------------------------------------------------------------------
def init_params(key):
    ks = jax.random.split(key, 6)

    def linear(kw, kb, fan_in, fan_out):
        bound = 1.0 / math.sqrt(fan_in)
        w = jax.random.uniform(kw, (fan_in, fan_out), jnp.float32, -bound, bound)
        b = jax.random.uniform(kb, (fan_out,), jnp.float32, -bound, bound)
        return w, b

    w1, b1 = linear(ks[0], ks[1], IN_SIZE, HID)
    w2, b2 = linear(ks[2], ks[3], HID, HID)
    w3, b3 = linear(ks[4], ks[5], HID, OUT_SIZE)
    return {"w1": w1, "b1": b1, "w2": w2, "b2": b2, "w3": w3, "b3": b3}


def reference_forward(x, params):
    h1 = jnp.maximum(x @ params["w1"] + params["b1"], 0.0)
    h2 = jnp.maximum(h1 @ params["w2"] + params["b2"], 0.0)
    return h2 @ params["w3"] + params["b3"]


if __name__ == "__main__":
    key = jax.random.PRNGKey(0)
    k_params, k_x = jax.random.split(key)

    B = 2
    x = jax.random.normal(k_x, (B, IN_SIZE), jnp.float32)

    params = init_params(k_params)
    padded_params = prepare_params(params)   # pad + cast ONCE; reused every call

    out = dqn_forward(x, padded_params)
    out = jax.block_until_ready(out)

    ref = reference_forward(x, params)
    assert out.shape == (B, OUT_SIZE)
    assert bool(jnp.all(jnp.isfinite(out)))
    # bf16 weights/activations in the two big matmuls -> allow ~1% drift vs f32 ref
    assert jnp.allclose(out, ref, atol=3e-2, rtol=3e-2), (out, ref)

    print("KERNEL_OK")
</pallas_src>

<mosaic_0001>
module attributes {stable_mosaic.version = 11 : i64} {
  func.func @_dqn_kernel(%arg0: i32, %arg1: memref<2x106xf32, #tpu.memory_space<vmem>>, %arg2: memref<106x256xbf16, #tpu.memory_space<vmem>>, %arg3: memref<1x256xf32, #tpu.memory_space<vmem>>, %arg4: memref<256x256xbf16, #tpu.memory_space<vmem>>, %arg5: memref<1x256xf32, #tpu.memory_space<vmem>>, %arg6: memref<1x256xf32, #tpu.memory_space<vmem>>, %arg7: memref<1x1xf32, #tpu.memory_space<smem>>, %arg8: memref<1x1x2xf32, #tpu.memory_space<vmem>>) attributes {dimension_semantics = [#tpu.dimension_semantics<parallel>], iteration_bounds = array<i64: 1>, scalar_prefetch = 0 : i64, scratch_operands = 0 : i64, tpu.core_type = #tpu.core_type<tc>, window_params = [{transform_indices = @transform_0, window_bounds = array<i64: 2, 106>}, {pipeline_mode = #tpu.pipeline_mode<synchronous>, transform_indices = @transform_1, window_bounds = array<i64: 106, 256>}, {pipeline_mode = #tpu.pipeline_mode<synchronous>, transform_indices = @transform_2, window_bounds = array<i64: 1, 256>}, {pipeline_mode = #tpu.pipeline_mode<synchronous>, transform_indices = @transform_3, window_bounds = array<i64: 256, 256>}, {pipeline_mode = #tpu.pipeline_mode<synchronous>, transform_indices = @transform_4, window_bounds = array<i64: 1, 256>}, {pipeline_mode = #tpu.pipeline_mode<synchronous>, transform_indices = @transform_5, window_bounds = array<i64: 1, 256>}, {transform_indices = @transform_6, window_bounds = array<i64: 1, 1>}, {transform_indices = @transform_7, window_bounds = array<i64: 1, 1, 2>}]} {
    %c0 = arith.constant 0 : index
    %c0_0 = arith.constant 0 : index
    %0 = vector.load %arg1[%c0, %c0_0] : memref<2x106xf32, #tpu.memory_space<vmem>>, vector<2x106xf32>
    %1 = arith.truncf %0 : vector<2x106xf32> to vector<2x106xbf16>
    %c0_1 = arith.constant 0 : index
    %c0_2 = arith.constant 0 : index
    %2 = vector.load %arg2[%c0_1, %c0_2] : memref<106x256xbf16, #tpu.memory_space<vmem>>, vector<106x256xbf16>
    %cst = arith.constant dense<0.000000e+00> : vector<2x256xf32>
    %3 = tpu.matmul %1, %2, %cst {dimension_numbers = #tpu.dot_dimension_numbers<[1], [0], [0], [1], [0, 0, 1, 1], [], []>} : vector<2x106xbf16>, vector<106x256xbf16>, vector<2x256xf32> -> vector<2x256xf32>
    %c0_3 = arith.constant 0 : index
    %c0_4 = arith.constant 0 : index
    %4 = vector.load %arg3[%c0_3, %c0_4] : memref<1x256xf32, #tpu.memory_space<vmem>>, vector<1x256xf32>
    %5 = vector.broadcast %4 : vector<1x256xf32> to vector<2x256xf32>
    %6 = arith.addf %3, %5 : vector<2x256xf32>
    %cst_5 = arith.constant 0.000000e+00 : f32
    %7 = vector.broadcast %cst_5 : f32 to vector<2x256xf32>
    %8 = arith.maximumf %6, %7 : vector<2x256xf32>
    %9 = arith.truncf %8 : vector<2x256xf32> to vector<2x256xbf16>
    %c0_6 = arith.constant 0 : index
    %c0_7 = arith.constant 0 : index
    %10 = vector.load %arg4[%c0_6, %c0_7] : memref<256x256xbf16, #tpu.memory_space<vmem>>, vector<256x256xbf16>
    %cst_8 = arith.constant dense<0.000000e+00> : vector<2x256xf32>
    %11 = tpu.matmul %9, %10, %cst_8 {dimension_numbers = #tpu.dot_dimension_numbers<[1], [0], [0], [1], [0, 0, 1, 1], [], []>} : vector<2x256xbf16>, vector<256x256xbf16>, vector<2x256xf32> -> vector<2x256xf32>
    %c0_9 = arith.constant 0 : index
    %c0_10 = arith.constant 0 : index
    %12 = vector.load %arg5[%c0_9, %c0_10] : memref<1x256xf32, #tpu.memory_space<vmem>>, vector<1x256xf32>
    %13 = vector.broadcast %12 : vector<1x256xf32> to vector<2x256xf32>
    %14 = arith.addf %11, %13 : vector<2x256xf32>
    %cst_11 = arith.constant 0.000000e+00 : f32
    %15 = vector.broadcast %cst_11 : f32 to vector<2x256xf32>
    %16 = arith.maximumf %14, %15 : vector<2x256xf32>
    %c0_12 = arith.constant 0 : index
    %c0_13 = arith.constant 0 : index
    %17 = vector.load %arg6[%c0_12, %c0_13] : memref<1x256xf32, #tpu.memory_space<vmem>>, vector<1x256xf32>
    %cst_14 = arith.constant dense<0.000000e+00> : vector<1x2xf32>
    %18 = tpu.matmul %17, %16, %cst_14 {dimension_numbers = #tpu.dot_dimension_numbers<[1], [1], [0], [0], [0, 0, 1, 0], [], []>} : vector<1x256xf32>, vector<2x256xf32>, vector<1x2xf32> -> vector<1x2xf32>
    %c0_15 = arith.constant 0 : index
    %c0_16 = arith.constant 0 : index
    %19 = memref.load %arg7[%c0_15, %c0_16] : memref<1x1xf32, #tpu.memory_space<smem>>
    %20 = vector.broadcast %19 : f32 to vector<1x2xf32>
    %21 = arith.addf %18, %20 : vector<1x2xf32>
    %22 = vector.shape_cast %21 : vector<1x2xf32> to vector<1x1x2xf32>
    %c0_17 = arith.constant 0 : index
    %c0_18 = arith.constant 0 : index
    %c0_19 = arith.constant 0 : index
    %23 = vector.load %arg8[%c0_17, %c0_18, %c0_19] : memref<1x1x2xf32, #tpu.memory_space<vmem>>, vector<1x1x2xf32>
    tpu.vector_store %arg8[%c0_17, %c0_18, %c0_19], %22 {strides = array<i32>} : memref<1x1x2xf32, #tpu.memory_space<vmem>>, vector<1x1x2xf32>,
    return
  }
  func.func @transform_0(%arg0: i32) -> (i32, i32) {
    %c0_i32 = arith.constant 0 : i32
    %c0_i32_0 = arith.constant 0 : i32
    return %arg0, %c0_i32 : i32, i32
  }
  func.func @transform_1(%arg0: i32) -> (i32, i32) {
    %c0_i32 = arith.constant 0 : i32
    %c0_i32_0 = arith.constant 0 : i32
    %c0_i32_1 = arith.constant 0 : i32
    return %c0_i32, %c0_i32_0 : i32, i32
  }
  func.func @transform_2(%arg0: i32) -> (i32, i32) {
    %c0_i32 = arith.constant 0 : i32
    %c0_i32_0 = arith.constant 0 : i32
    %c0_i32_1 = arith.constant 0 : i32
    return %c0_i32, %c0_i32_0 : i32, i32
  }
  func.func @transform_3(%arg0: i32) -> (i32, i32) {
    %c0_i32 = arith.constant 0 : i32
    %c0_i32_0 = arith.constant 0 : i32
    %c0_i32_1 = arith.constant 0 : i32
    return %c0_i32, %c0_i32_0 : i32, i32
  }
  func.func @transform_4(%arg0: i32) -> (i32, i32) {
    %c0_i32 = arith.constant 0 : i32
    %c0_i32_0 = arith.constant 0 : i32
    %c0_i32_1 = arith.constant 0 : i32
    return %c0_i32, %c0_i32_0 : i32, i32
  }
  func.func @transform_5(%arg0: i32) -> (i32, i32) {
    %c0_i32 = arith.constant 0 : i32
    %c0_i32_0 = arith.constant 0 : i32
    %c0_i32_1 = arith.constant 0 : i32
    return %c0_i32, %c0_i32_0 : i32, i32
  }
  func.func @transform_6(%arg0: i32) -> (i32, i32) {
    %c0_i32 = arith.constant 0 : i32
    %c0_i32_0 = arith.constant 0 : i32
    %c0_i32_1 = arith.constant 0 : i32
    return %c0_i32, %c0_i32_0 : i32, i32
  }
  func.func @transform_7(%arg0: i32) -> (i32, i32, i32) {
    %c0_i32 = arith.constant 0 : i32
    %c0_i32_0 = arith.constant 0 : i32
    %c0_i32_1 = arith.constant 0 : i32
    return %arg0, %c0_i32, %c0_i32_0 : i32, i32, i32
  }
}

</mosaic_0001>

<bundles_post_ra>
// kernel: dqn_forward.1
= control target key start
LH: loop header
LB: loop body
LE: loop exit
PB: predicated region body
PF: predicated region fallthrough
CT: control target
= control target key end

     0   :  { %13 = vsyncpa [#allocation4], 0  ;;  %s980_s0 = inlined_call_operand.vmem [shape: f32[2,106], index: 0, kind: input, shape index: {}]   ;;  %s981_s1 = inlined_call_operand.hbm [shape: bf16[106,256], index: 1, kind: input, shape index: {}]   ;;  %s982_s2 = inlined_call_operand.hbm [shape: f32[1,256], index: 2, kind: input, shape index: {}]   ;;  %s983_s3 = inlined_call_operand.hbm [shape: bf16[256,256], index: 3, kind: input, shape index: {}]   ;;  %s984_s4 = inlined_call_operand.hbm [shape: f32[1,256], index: 4, kind: input, shape index: {}]   ;;  %s985_s5 = inlined_call_operand.vmem [shape: f32[1,256], index: 5, kind: input, shape index: {}]   ;;  %s986_s6 = inlined_call_operand.<no memory space> [shape: f32[1,1], index: 6, kind: input, shape index: {}]   ;;  %s987_s7 = inlined_call_operand.hbm [shape: f32[1,1,2], index: 7, kind: output, shape index: {}]  }
   0x1   :  { %14 = vsyncpa [#allocation7], 0 }
   0x2   :  { %15 = vsyncpa [#allocation10], 0  ;;  %s37_s26 = sshll.u32 %s982_s2, 4  ;;  %s38_s26 = int_to_ptr.hbm [resolvable:$true] %s37_s26 }
   0x3   :  { %16 = vsyncpa [#allocation5], 0  ;;  %s907_s27 = smov [#allocation6]   ;;  %s23_s8 = sshll.u32 %s981_s1, 4  ;;  %s24_s8 = int_to_ptr.hbm [resolvable:$true] %s23_s8 }
   0x4   :  { %s39_s28 = sshll.u32 %s907_s27, 4  ;;  %s908_s9 = smov [#allocation3]   ;;  %s40_s28 = int_to_ptr.vmem [resolvable:$true] %s39_s28 }
   0x5   :  { %42 = dma.hbm_to_vmem [thread:$0]  %s38_s26, 32, %s40_s28, [#allocation7]  }
   0x6   :  { %s25_s10 = sshll.u32 %s908_s9, 4  ;;  %s909_s11 = smov 128   ;;  %s26_s10 = int_to_ptr.vmem [resolvable:$true] %s25_s10 }
   0x7   :  { %s910_s12 = smov 8   ;;  %s47_s2 = sshll.u32 %s983_s3, 4  ;;  %s48_s2 = int_to_ptr.hbm [resolvable:$true] %s47_s2 }
   0x8   :  { %31 = dma.hbm_to_vmem [thread:$0]  %s24_s8, 1792, %s26_s10, [#allocation4], %s909_s11, %s909_s11, %s910_s12  }
   0x9   :  { %s911_s15 = smov [#allocation8]   ;;  %s61_s1 = sshll.u32 %s984_s4, 4  ;;  %s62_s1 = int_to_ptr.hbm [resolvable:$true] %s61_s1 }
   0xa   :  { %s49_s16 = sshll.u32 %s911_s15, 4  ;;  %s912_s19 = smov [#allocation9]   ;;  %s50_s16 = int_to_ptr.vmem [resolvable:$true] %s49_s16 }
   0xb   :  { %55 = dma.hbm_to_vmem [thread:$0]  %s48_s2, 4096, %s50_s16, [#allocation7], %s909_s11, %s909_s11, %s910_s12  }
   0xc   :  { %s63_s20 = sshll.u32 %s912_s19, 4  ;;  %s64_s20 = int_to_ptr.vmem [resolvable:$true] %s63_s20 }
   0xd   :  { %66 = dma.hbm_to_vmem [thread:$0]  %s62_s1, 32, %s64_s20, [#allocation10]  }
   0xe   :  { %899 = dma.done.wait [#allocation4], 1792  }
   0xf   :  { %900 = vsyncadd [#allocation4], 4294965504 }
  0x10   :  { %901 = dma.done.wait [#allocation7], 4128  }
  0x11   :  { %902 = vsyncadd [#allocation7], 4294963168 }
  0x12   :  { %903 = dma.done.wait [#allocation10], 32  }
  0x13   :  { %904 = vsyncadd [#allocation10], 4294967264  ;;  %vm182_vm0 = vcmask 1044480   ;;  %v590_v0 = vld [vmem:[#allocation3 + $0x60] sm:$0xf]  ;;  %vm178_vm1 = vcmask 867328  }
  0x14   :  { %v739_v1 = vld [vmem:[#allocation3 + $0x64] sm:$0x10]  ;;  %v738_v2 = vld [vmem:[#allocation3 + $0x64] sm:$0xf]  ;;  %v592_v4 = vld [vmem:[#allocation3 + $0x68] sm:$0x10] }
  0x15   :  { %v591_v3 = vor.u32 %v739_v1, %v590_v0  ;;  %v582_v5 = vld [vmem:[#allocation3 + $0x50] sm:$0xf]  ;;  %v737_v6 = vld [vmem:[#allocation3 + $0x54] sm:$0xf0]  ;;  %v595_v7 = vor.u32 %v738_v2, %v592_v4  ;;  %v736_v8 = vld [vmem:[#allocation3 + $0x54] sm:$0xf] }
  0x16   :  { %v584_v9 = vld [vmem:[#allocation3 + $0x58] sm:$0xf0]  ;;  %v583_v12 = vor.u32 %v737_v6, %v582_v5  ;;  %v574_v14 = vld [vmem:[#allocation3 + $0x40] sm:$0xf]  ;;  %v735_v15 = vld [vmem:[#allocation3 + $0x44] sm:$0xf0] }
  0x17   :  { %v184_v10 = vsel %vm182_vm0, %v591_v3, 0  ;;  %v187_v11 = vsel %vm182_vm0, %v595_v7, 0  ;;  %v587_v13 = vor.u32 %v736_v8, %v584_v9  ;;  %v734_v16 = vld [vmem:[#allocation3 + $0x44] sm:$0xf]  ;;  %v576_v17 = vld [vmem:[#allocation3 + $0x48] sm:$0xf0]  ;;  %v575_v18 = vor.u32 %v735_v15, %v574_v14 }
  0x18   :  { %190 = vmatpush.bf16.msra.mxu0 %v184_v10  ;;  %203 = vmatpush.bf16.msra.mxu1 %v187_v11  ;;  %v579_v19 = vor.u32 %v734_v16, %v576_v17  ;;  %v566_v20 = vld [vmem:[#allocation3 + $0x30] sm:$0xf]  ;;  %v733_v21 = vld [vmem:[#allocation3 + $0x34] sm:$0xf0]  ;;  %v732_v22 = vld [vmem:[#allocation3 + $0x34] sm:$0xf] }
  0x19   :  { %v568_v23 = vld [vmem:[#allocation3 + $0x38] sm:$0xf0]  ;;  %v656_v24 = vld [vmem:[#allocation8 + $0x70] sm:$0xf]  ;;  %v755_v25 = vld [vmem:[#allocation8 + $0x74] sm:$0xf0]  ;;  %v567_v29 = vor.u32 %v733_v21, %v566_v20 }
  0x1a   :  { %v657_v26 = vor.u32 %v755_v25, %v656_v24  ;;  %v720_v27 = vld [vmem:[#allocation8 + $0xf0] sm:$0xf]  ;;  %v771_v28 = vld [vmem:[#allocation8 + $0xf4] sm:$0xf0]  ;;  %v571_v33 = vor.u32 %v732_v22, %v568_v23  ;;  %v648_v34 = vld [vmem:[#allocation8 + $0x60] sm:$0xf] }
  0x1b   :  { %v558_v30 = vld [vmem:[#allocation3 + $0x20] sm:$0xf]  ;;  %v731_v31 = vld [vmem:[#allocation3 + $0x24] sm:$0xf0]  ;;  %v721_v32 = vor.u32 %v771_v28, %v720_v27  ;;  %v753_v35 = vld [vmem:[#allocation8 + $0x64] sm:$0xf0] }
  0x1c   :  { %191 = vmatpush.bf16.msra.mxu0 %v583_v12  ;;  %204 = vmatpush.bf16.msra.mxu1 %v587_v13  ;;  %v712_v36 = vld [vmem:[#allocation8 + $0xe0] sm:$0xf]  ;;  %v730_v37 = vld [vmem:[#allocation3 + $0x24] sm:$0xf]  ;;  %v560_v38 = vld [vmem:[#allocation3 + $0x28] sm:$0xf0]  ;;  %v649_v39 = vor.u32 %v753_v35, %v648_v34  ;;  %v559_v43 = vor.u32 %v731_v31, %v558_v30 }
  0x1d   :  { %417 = vmatpush.bf16.msra.mxu2 %v657_v26  ;;  %430 = vmatpush.bf16.msra.mxu3 %v721_v32  ;;  %v769_v40 = vld [vmem:[#allocation8 + $0xe4] sm:$0xf0]  ;;  %v640_v42 = vld [vmem:[#allocation8 + $0x50] sm:$0xf]  ;;  %v751_v44 = vld [vmem:[#allocation8 + $0x54] sm:$0xf0]  ;;  %v563_v47 = vor.u32 %v730_v37, %v560_v38 }
  0x1e   :  { %v713_v41 = vor.u32 %v769_v40, %v712_v36  ;;  %v704_v45 = vld [vmem:[#allocation8 + $0xd0] sm:$0xf]  ;;  %v767_v46 = vld [vmem:[#allocation8 + $0xd4] sm:$0xf0]  ;;  %v550_v48 = vld [vmem:[#allocation3 + $0x10] sm:$0xf]  ;;  %v641_v51 = vor.u32 %v751_v44, %v640_v42 }
  0x1f   :  { %v729_v49 = vld [vmem:[#allocation3 + $0x14] sm:$0xf0]  ;;  %v728_v50 = vld [vmem:[#allocation3 + $0x14] sm:$0xf]  ;;  %v552_v52 = vld [vmem:[#allocation3 + $0x18] sm:$0xf0]  ;;  %v705_v53 = vor.u32 %v767_v46, %v704_v45 }
  0x20   :  { %192 = vmatpush.bf16.msra.mxu0 %v575_v18  ;;  %205 = vmatpush.bf16.msra.mxu1 %v579_v19  ;;  %v632_v54 = vld [vmem:[#allocation8 + $0x40] sm:$0xf]  ;;  %v749_v55 = vld [vmem:[#allocation8 + $0x44] sm:$0xf0]  ;;  %v551_v58 = vor.u32 %v729_v49, %v550_v48  ;;  %v542_v59 = vld [vmem:[#allocation3] sm:$0xf]  ;;  %v555_v60 = vor.u32 %v728_v50, %v552_v52 }
  0x21   :  { %418 = vmatpush.bf16.msra.mxu2 %v649_v39  ;;  %431 = vmatpush.bf16.msra.mxu3 %v713_v41  ;;  %v696_v56 = vld [vmem:[#allocation8 + $0xc0] sm:$0xf]  ;;  %v765_v57 = vld [vmem:[#allocation8 + $0xc4] sm:$0xf0]  ;;  %v727_v61 = vld [vmem:[#allocation3 + $0x4] sm:$0xf0]  ;;  %v633_v0 = vor.u32 %v749_v55, %v632_v54 }
  0x22   :  { %v726_v62 = vld [vmem:[#allocation3 + $0x4] sm:$0xf]  ;;  %v544_v63 = vld [vmem:[#allocation3 + $0x8] sm:$0xf0]  ;;  %v697_v4 = vor.u32 %v765_v57, %v696_v56  ;;  %v543_v8 = vor.u32 %v727_v61, %v542_v59  ;;  %v88_v9 = vld [vmem:[%s980_s0] sm:$0x3] }
  0x23   :  { %v754_v1 = vld [vmem:[#allocation8 + $0x74] sm:$0xf]  ;;  %v658_v2 = vld [vmem:[#allocation8 + $0x78] sm:$0xf0]  ;;  %v624_v6 = vld [vmem:[#allocation8 + $0x30] sm:$0xf]  ;;  %v547_v12 = vor.u32 %v726_v62, %v544_v63  ;;  %v89_v19 = vpack.c.bf16 %v88_v9, %v88_v9 }
  0x24   :  { %193 = vmatpush.bf16.msra.mxu0 %v567_v29  ;;  %206 = vmatpush.bf16.msra.mxu1 %v571_v33  ;;  %v770_v3 = vld [vmem:[#allocation8 + $0xf4] sm:$0xf]  ;;  %v722_v5 = vld [vmem:[#allocation8 + $0xf8] sm:$0xf0]  ;;  %v747_v7 = vld [vmem:[#allocation8 + $0x34] sm:$0xf0]  ;;  %v661_v13 = vor.u32 %v754_v1, %v658_v2 }
  0x25   :  { %419 = vmatpush.bf16.msra.mxu2 %v641_v51  ;;  %432 = vmatpush.bf16.msra.mxu3 %v705_v53  ;;  %v688_v10 = vld [vmem:[#allocation8 + $0xb0] sm:$0xf]  ;;  %v763_v11 = vld [vmem:[#allocation8 + $0xb4] sm:$0xf0]  ;;  %v725_v14 = vor.u32 %v770_v3, %v722_v5  ;;  %v752_v15 = vld [vmem:[#allocation8 + $0x64] sm:$0xf]  ;;  %v625_v18 = vor.u32 %v747_v7, %v624_v6 }
  0x26   :  { %v650_v16 = vld [vmem:[#allocation8 + $0x68] sm:$0xf0]  ;;  %v768_v17 = vld [vmem:[#allocation8 + $0xe4] sm:$0xf]  ;;  %v689_v21 = vor.u32 %v763_v11, %v688_v10  ;;  %v616_v22 = vld [vmem:[#allocation8 + $0x20] sm:$0xf] }
  0x27   :  { %v714_v20 = vld [vmem:[#allocation8 + $0xe8] sm:$0xf0]  ;;  %v745_v23 = vld [vmem:[#allocation8 + $0x24] sm:$0xf0]  ;;  %v680_v24 = vld [vmem:[#allocation8 + $0xa0] sm:$0xf]  ;;  %v653_v26 = vor.u32 %v752_v15, %v650_v16 }
  0x28   :  { %194 = vmatpush.bf16.msra.mxu0 %v559_v43  ;;  %207 = vmatpush.bf16.msra.mxu1 %v563_v47  ;;  %v761_v25 = vld [vmem:[#allocation8 + $0xa4] sm:$0xf0]  ;;  %v717_v27 = vor.u32 %v768_v17, %v714_v20  ;;  %v750_v28 = vld [vmem:[#allocation8 + $0x54] sm:$0xf]  ;;  %v642_v29 = vld [vmem:[#allocation8 + $0x58] sm:$0xf0]  ;;  %v617_v30 = vor.u32 %v745_v23, %v616_v22 }
  0x29   :  { %420 = vmatpush.bf16.msra.mxu2 %v633_v0  ;;  %433 = vmatpush.bf16.msra.mxu3 %v697_v4  ;;  %v766_v31 = vld [vmem:[#allocation8 + $0xd4] sm:$0xf]  ;;  %v706_v32 = vld [vmem:[#allocation8 + $0xd8] sm:$0xf0]  ;;  %v681_v33 = vor.u32 %v761_v25, %v680_v24  ;;  %v645_v34 = vor.u32 %v750_v28, %v642_v29  ;;  %v748_v36 = vld [vmem:[#allocation8 + $0x44] sm:$0xf] }
  0x2a   :  { %v709_v35 = vor.u32 %v766_v31, %v706_v32  ;;  %v634_v37 = vld [vmem:[#allocation8 + $0x48] sm:$0xf0]  ;;  %v764_v38 = vld [vmem:[#allocation8 + $0xc4] sm:$0xf]  ;;  %v746_v42 = vld [vmem:[#allocation8 + $0x34] sm:$0xf] }
  0x2b   :  { %v698_v39 = vld [vmem:[#allocation8 + $0xc8] sm:$0xf0]  ;;  %v637_v40 = vor.u32 %v748_v36, %v634_v37  ;;  %v626_v43 = vld [vmem:[#allocation8 + $0x38] sm:$0xf0]  ;;  %v762_v44 = vld [vmem:[#allocation8 + $0xb4] sm:$0xf] }
  0x2c   :  { %195 = vmatpush.bf16.msra.mxu0 %v551_v58  ;;  %208 = vmatpush.bf16.msra.mxu1 %v555_v60  ;;  %v701_v41 = vor.u32 %v764_v38, %v698_v39  ;;  %v690_v45 = vld [vmem:[#allocation8 + $0xb8] sm:$0xf0]  ;;  %v629_v46 = vor.u32 %v746_v42, %v626_v43  ;;  %v744_v48 = vld [vmem:[#allocation8 + $0x24] sm:$0xf]  ;;  %v618_v49 = vld [vmem:[#allocation8 + $0x28] sm:$0xf0] }
  0x2d   :  { %421 = vmatpush.bf16.msra.mxu2 %v625_v18  ;;  %434 = vmatpush.bf16.msra.mxu3 %v689_v21  ;;  %v693_v47 = vor.u32 %v762_v44, %v690_v45  ;;  %v760_v50 = vld [vmem:[#allocation8 + $0xa4] sm:$0xf]  ;;  %v682_v51 = vld [vmem:[#allocation8 + $0xa8] sm:$0xf0]  ;;  %v621_v52 = vor.u32 %v744_v48, %v618_v49  ;;  %v608_v54 = vld [vmem:[#allocation8 + $0x10] sm:$0xf] }
  0x2e   :  { %v685_v53 = vor.u32 %v760_v50, %v682_v51  ;;  %v743_v55 = vld [vmem:[#allocation8 + $0x14] sm:$0xf0]  ;;  %v672_v56 = vld [vmem:[#allocation8 + $0x90] sm:$0xf]  ;;  %v742_v59 = vld [vmem:[#allocation8 + $0x14] sm:$0xf] }
  0x2f   :  { %v609_v57 = vor.u32 %v743_v55, %v608_v54  ;;  %v759_v58 = vld [vmem:[#allocation8 + $0x94] sm:$0xf0]  ;;  %v610_v60 = vld [vmem:[#allocation8 + $0x18] sm:$0xf0]  ;;  %v758_v63 = vld [vmem:[#allocation8 + $0x94] sm:$0xf] }
  0x30   :  { %196 = vmatpush.bf16.msra.mxu0 %v543_v8  ;;  %209 = vmatpush.bf16.msra.mxu1 %v547_v12  ;;  %v673_v61 = vor.u32 %v759_v58, %v672_v56  ;;  %v613_v62 = vor.u32 %v742_v59, %v610_v60  ;;  %v674_v0 = vld [vmem:[#allocation8 + $0x98] sm:$0xf0]  ;;  %v600_v2 = vld [vmem:[#allocation8] sm:$0xf]  ;;  %v741_v3 = vld [vmem:[#allocation8 + $0x4] sm:$0xf0] }
  0x31   :  { %422 = vmatpush.bf16.msra.mxu2 %v617_v30  ;;  %435 = vmatpush.bf16.msra.mxu3 %v681_v33  ;;  %v677_v1 = vor.u32 %v758_v63, %v674_v0  ;;  %v664_v4 = vld [vmem:[#allocation8 + $0x80] sm:$0xf]  ;;  %v601_v5 = vor.u32 %v741_v3, %v600_v2  ;;  %v757_v6 = vld [vmem:[#allocation8 + $0x84] sm:$0xf0]  ;;  %v740_v7 = vld [vmem:[#allocation8 + $0x4] sm:$0xf] }
  0x32   :  { %v602_v8 = vld [vmem:[#allocation8 + $0x8] sm:$0xf0]  ;;  %v665_v9 = vor.u32 %v757_v6, %v664_v4  ;;  %v756_v11 = vld [vmem:[#allocation8 + $0x84] sm:$0xf]  ;;  %s528_s27 = sshll.u32 %s987_s7, 4  ;;  %vm519_vm2 = vcmask 8192   ;;  %s529_s27 = int_to_ptr.hbm [resolvable:$true] %s528_s27 }
  0x33   :  { %596 = vmatmul.msk.bf16.vlgmr.msra.gmra.mxu0 %vm178_vm1, %v89_v19  ;;  %597 = vmatmul.msk.bf16.vlgmr.msra.gmra.mxu1 %vm178_vm1, %v89_v19  ;;  %v605_v10 = vor.u32 %v740_v7, %v602_v8  ;;  %v666_v12 = vld [vmem:[#allocation8 + $0x88] sm:$0xf0] }
  0x34   :  { %443 = vmatpush.bf16.msrb.mxu0 %v661_v13  ;;  %456 = vmatpush.bf16.msrb.mxu1 %v725_v14  ;;  %v669_v13 = vor.u32 %v756_v11, %v666_v12  ;;  %v104_v14 = vld [vmem:[#allocation6] sm:$0x3] }
  0x35   :  { %423 = vmatpush.bf16.msra.mxu2 %v609_v57  ;;  %436 = vmatpush.bf16.msra.mxu3 %v673_v61  ;;  %v106_v15 = vperm.slane %v104_v14, 0  ;;  %v107_v16 = vperm.slane %v104_v14, 1 }
  0x38   :  { %444 = vmatpush.bf16.msrb.mxu0 %v653_v26  ;;  %457 = vmatpush.bf16.msrb.mxu1 %v717_v27  ;;  %v251_v27 = vld [vmem:[#allocation9] sm:$0x3] }
  0x39   :  { %424 = vmatpush.bf16.msra.mxu2 %v601_v5  ;;  %437 = vmatpush.bf16.msra.mxu3 %v665_v9  ;;  %v254_v28 = vperm.slane %v251_v27, 1  ;;  %v253_v33 = vperm.slane %v251_v27, 0 }
  0x3c   :  { %445 = vmatpush.bf16.msrb.mxu0 %v645_v34  ;;  %458 = vmatpush.bf16.msrb.mxu1 %v709_v35  ;;  %v471_v35 = vld [vmem:[%s985_s5] sm:$0x3]  ;;  %s913_s5 = smov [#allocation11]  }
  0x3d   :  { %v476_v37 = vperm.slane %v471_v35, 1  ;;  %v475_v44 = vperm.slane %v471_v35, 0  ;;  %s526_s24 = sshll.u32 %s913_s5, 4  ;;  %s527_s24 = int_to_ptr.vmem [resolvable:$true] %s526_s24 }
  0x40   :  { %446 = vmatpush.bf16.msrb.mxu0 %v637_v40  ;;  %459 = vmatpush.bf16.msrb.mxu1 %v701_v41 }
  0x44   :  { %447 = vmatpush.bf16.msrb.mxu0 %v629_v46  ;;  %460 = vmatpush.bf16.msrb.mxu1 %v693_v47  ;;  %v473_v47 = vstv %s986_s6 }
  0x48   :  { %448 = vmatpush.bf16.msrb.mxu0 %v621_v52  ;;  %461 = vmatpush.bf16.msrb.mxu1 %v685_v53 }
  0x4c   :  { %449 = vmatpush.bf16.msrb.mxu0 %v613_v62  ;;  %462 = vmatpush.bf16.msrb.mxu1 %v677_v1 }
  0x50   :  { %450 = vmatpush.bf16.msrb.mxu0 %v605_v10  ;;  %463 = vmatpush.bf16.msrb.mxu1 %v669_v13 }
  0xb0   :  { %v198_v17 = vpop.f32.mrf.mxu0  ;;  %v211_v19 = vpop.f32.mrf.mxu1 }
  0xb1   :  { %v199_v18 = vadd.f32 %v198_v17, %v106_v15  ;;  %v212_v20 = vadd.f32 %v211_v19, %v107_v16 }
  0xb3   :  { %v215_v21 = vmax.f32 %v199_v18, 0.0  ;;  %v216_v22 = vmax.f32 %v212_v20, 0.0 }
  0xb5   :  { %v217_v23 = vpack.c.bf16 %v215_v21, %v215_v21  ;;  %v218_v24 = vpack.c.bf16 %v216_v22, %v216_v22 }
  0xb7   :  { %425 = vmatmul.bf16.vlgmr.msra.gmra.mxu2 %v217_v23  ;;  %451 = vmatmul.bf16.vlgmr.msrb.gmra.mxu0 %v217_v23 }
  0xb8   :  { %438 = vmatmul.bf16.vlgmr.msra.gmra.mxu3 %v218_v24  ;;  %464 = vmatmul.bf16.vlgmr.msrb.gmra.mxu1 %v218_v24  ;;  %v200_v25 = vpop.f32.mrf.mxu0  ;;  %v213_v26 = vpop.f32.mrf.mxu1 }
 0x134   :  { %v452_v29 = vpop.f32.mrf.mxu0 }
 0x135   :  { %v453_v30 = vadd.f32 %v452_v29, %v254_v28  ;;  %v465_v31 = vpop.f32.mrf.mxu1 }
 0x137   :  { %v466_v32 = vadd.f32 %v465_v31, %v453_v30 }
 0x139   :  { %v470_v34 = vmax.f32 %v466_v32, 0.0 }
 0x13a   :  { %v426_v36 = vpop.f32.mrf.mxu2 }
 0x13b   :  { %v427_v38 = vadd.f32 %v426_v36, %v253_v33  ;;  %v439_v39 = vpop.f32.mrf.mxu3  ;;  %514 = vmatpush.xpose.msrb.mxu3 %v470_v34 }
 0x13c   :  { %v454_v40 = vpop.f32.mrf.mxu0 }
 0x13d   :  { %v440_v41 = vadd.f32 %v439_v39, %v427_v38  ;;  %v467_v42 = vpop.f32.mrf.mxu1 }
 0x13e   :  { %515 = vmatmul.f32.vlgmr.msrb.gmra.mxu3 %v476_v37 }
 0x13f   :  { %v469_v43 = vmax.f32 %v440_v41, 0.0 }
 0x141   :  { %494 = vmatpush.xpose.msrb.mxu2 %v469_v43 }
 0x142   :  { %v428_v45 = vpop.f32.mrf.mxu2 }
 0x143   :  { %v441_v46 = vpop.f32.mrf.mxu3 }
 0x144   :  { %495 = vmatmul.f32.vlgmr.msrb.gmra.mxu2 %v475_v44 }
 0x1c1   :  { %v516_v49 = vpop.f32.mrf.mxu3 }
 0x1c7   :  { %v496_v48 = vpop.f32.mrf.mxu2 }
 0x1c8   :  { %v497_v50 = vadd.f32 %v496_v48, %v473_v47 }
 0x1ca   :  { %v517_v51 = vadd.f32 %v516_v49, %v497_v50 }
 0x1cc   :  { %520 = vst.msk [vmem:[#allocation11] sm:$0x1] %vm519_vm2, %v517_v51 }
 0x1cd   :  { %531 = dma.vmem_to_hbm [thread:$0]  %s527_s24, 16, %s529_s27, [#allocation5]  }
 0x1ce   :  { %905 = dma.done.wait [#allocation5], 16  }
 0x1cf   :  { %906 = vsyncadd [#allocation5], 4294967280 }
 0x1d0   :  { %536 = vsyncpa [#allocation4], 1 }
 0x1d1   :  { %537 = vsyncpa [#allocation7], 1 }
 0x1d2   :  { %538 = vsyncpa [#allocation10], 1 }
 0x1d3   :  { %539 = vsyncpa [#allocation5], 1 }

</bundles_post_ra>
